<compile_context>
chip_gen: v6e
topology: v6e:2x2x1
jax: 0.10.0
libtpu: 0.0.40
codegen_flags: <defaults>
</compile_context>

<pallas_src>
import jax
import jax.numpy as jnp
from jax.experimental import pallas as pl
from jax.experimental.pallas import tpu as pltpu

IN_FEATURES = 10
HIDDEN = 16
NUM_CLASS = 4           # stand-in for config.num_class
NEG_SLOPE = 0.01        # torch.nn.functional.leaky_relu default


def _pick_tile_b():
    """Generation-dependent default batch tile (lanes per grid step).

    Per-step VMEM ~= 256 * tile_b bytes:
      x tile  (10 -> 16 sublanes) : 64 * tile_b, double-buffered
      out     ( 4 ->  8 sublanes) : 32 * tile_b, double-buffered
      h intermediate (16 sublanes): 64 * tile_b
    32768 -> ~8 MiB   (fits v5e's 16 MiB default scoped VMEM; safe on v7x)
    65536 -> ~16 MiB  (fits v6e's 32 MiB default scoped VMEM)

    Returns (tile_b, want_two_steps) where want_two_steps requests >= 2 grid
    steps so both v7x TensorCores get work.
    """
    try:
        kind = jax.devices()[0].device_kind.lower()
    except Exception:
        kind = ""
    if "v7" in kind or "7x" in kind:
        return 32768, True
    if "v6" in kind:
        return 65536, False
    # v5e / unknown: conservative
    return 32768, False


def fcnet_kernel(xt_ref, w1_ref, b1_ref, w2_ref, b2_ref, ot_ref):
    # xt: (10, TILE_B) feature-major; w1: (16, 10); b1: (16, 1); w2: (C, 16); b2: (C, 1)
    xt = xt_ref[...]
    # fc1 on the MXU, f32 accumulation
    h = jnp.dot(w1_ref[...], xt, preferred_element_type=jnp.float32) + b1_ref[...]
    # leaky_relu: single VALU max per vreg
    h = jnp.maximum(h, NEG_SLOPE * h)
    # dropout(p=0.25): inference-mode identity
    # fc7 on the MXU
    o = jnp.dot(w2_ref[...], h, preferred_element_type=jnp.float32) + b2_ref[...]
    # (C, TILE_B) store: batch on lanes -> full-lane, unmasked stores
    ot_ref[...] = o.astype(ot_ref.dtype)


def fcnet_forward(x, w1, b1, w2, b2, *, tile_b=None,
                  feature_major_in=False, feature_major_out=False):
    """FcNet forward.

    x: (B, 10)  [or (10, B) if feature_major_in=True -- avoids the input transpose].
    Weights in PyTorch layout: w1 (16,10), b1 (16,), w2 (C,16), b2 (C,).
    Returns (B, C)  [or the lane-dense (C, B) slab if feature_major_out=True].
    Inputs may be bf16 (accumulation stays f32); output is f32.
    """
    num_class = w2.shape[0]

    if feature_major_in:
        xt = x                       # (10, B): no layout plumbing
        B = x.shape[1]
    else:
        B = x.shape[0]
        xt = x.T                     # layout plumbing only; pass feature-major to skip

    # Pad batch only up to a 128-lane multiple (never to a tile multiple).
    b128 = pl.cdiv(B, 128) * 128
    if b128 != B:
        xt = jnp.pad(xt, ((0, 0), (0, b128 - B)))

    if tile_b is None:
        tile_b, want_two_steps = _pick_tile_b()
    else:
        want_two_steps = False
    tile_b = int(tile_b)
    if want_two_steps and b128 >= 256:
        # v7x megacore: ensure >= 2 grid steps so both TensorCores get work.
        tile_b = min(tile_b, 128 * pl.cdiv(b128 // 128, 2))
    tile_b = max(128, (min(tile_b, b128) // 128) * 128)
    grid = (pl.cdiv(b128, tile_b),)   # partial last block handled by Pallas masking

    b1c = b1.reshape(HIDDEN, 1)
    b2c = b2.reshape(num_class, 1)

    flops = b128 * 2 * (IN_FEATURES * HIDDEN + HIDDEN * num_class)
    bytes_accessed = (b128 * (IN_FEATURES * xt.dtype.itemsize + num_class * 4)
                      + w1.size * w1.dtype.itemsize + b1.size * b1.dtype.itemsize
                      + w2.size * w2.dtype.itemsize + b2.size * b2.dtype.itemsize)

    out_t = pl.pallas_call(
        fcnet_kernel,
        out_shape=jax.ShapeDtypeStruct((num_class, b128), jnp.float32),
        grid=grid,
        in_specs=[
            # x tile: advances along the batch grid -> double-buffered / pipelined
            pl.BlockSpec((IN_FEATURES, tile_b), lambda i: (0, i)),
            # weights & biases: constant block index -> stay resident in VMEM
            pl.BlockSpec((HIDDEN, IN_FEATURES), lambda i: (0, 0)),
            pl.BlockSpec((HIDDEN, 1), lambda i: (0, 0)),
            pl.BlockSpec((num_class, HIDDEN), lambda i: (0, 0)),
            pl.BlockSpec((num_class, 1), lambda i: (0, 0)),
        ],
        out_specs=pl.BlockSpec((num_class, tile_b), lambda i: (0, i)),
        compiler_params=pltpu.CompilerParams(
            dimension_semantics=("parallel",),   # megacore split of the batch axis
        ),
        cost_estimate=pl.CostEstimate(
            flops=flops, transcendentals=0, bytes_accessed=bytes_accessed),
    )(xt, w1, b1c, w2, b2c)

    out_t = out_t[:, :B]              # strip the 128-lane padding
    if feature_major_out:
        return out_t                  # (C, B) lane-dense slab: fuse consumer over axis 0
    return out_t.T                    # (B, C) to match the PyTorch module


def fcnet_reference(x, w1, b1, w2, b2):
    h = x @ w1.T + b1
    h = jnp.where(h > 0, h, NEG_SLOPE * h)
    return h @ w2.T + b2


def init_params(key):
    # Deterministic init mimicking torch.nn.Linear's U(-1/sqrt(fan_in), 1/sqrt(fan_in))
    k1, k2, k3, k4 = jax.random.split(key, 4)
    bound1 = 1.0 / jnp.sqrt(IN_FEATURES)
    bound2 = 1.0 / jnp.sqrt(HIDDEN)
    w1 = jax.random.uniform(k1, (HIDDEN, IN_FEATURES), jnp.float32, -bound1, bound1)
    b1 = jax.random.uniform(k2, (HIDDEN,), jnp.float32, -bound1, bound1)
    w2 = jax.random.uniform(k3, (NUM_CLASS, HIDDEN), jnp.float32, -bound2, bound2)
    b2 = jax.random.uniform(k4, (NUM_CLASS,), jnp.float32, -bound2, bound2)
    return w1, b1, w2, b2


if __name__ == "__main__":
    key = jax.random.PRNGKey(0)
    kx, kp = jax.random.split(key)
    w1, b1, w2, b2 = init_params(kp)

    # 1) Small batch: padded up to a single 128-lane tile, default (auto) tile_b.
    batch = 8
    x = jax.random.normal(kx, (batch, IN_FEATURES), jnp.float32)
    out = jax.block_until_ready(fcnet_forward(x, w1, b1, w2, b2))
    ref = fcnet_reference(x, w1, b1, w2, b2)
    assert out.shape == (batch, NUM_CLASS)
    assert jnp.allclose(out, ref, atol=1e-5, rtol=1e-5), "mismatch vs JAX reference (batch=8)"

    # 2) Multi-step grid, tile divides padded batch exactly (333 -> 384 = 3 x 128).
    batch2 = 333
    x2 = jax.random.normal(kx, (batch2, IN_FEATURES), jnp.float32)
    out2 = jax.block_until_ready(fcnet_forward(x2, w1, b1, w2, b2, tile_b=128))
    ref2 = fcnet_reference(x2, w1, b1, w2, b2)
    assert out2.shape == (batch2, NUM_CLASS)
    assert jnp.allclose(out2, ref2, atol=1e-5, rtol=1e-5), "mismatch vs JAX reference (batch=333)"

    # 3) Partial last block (384 lanes, tile 256 -> grid=2 with a masked tail block).
    out3 = jax.block_until_ready(fcnet_forward(x2, w1, b1, w2, b2, tile_b=256))
    assert out3.shape == (batch2, NUM_CLASS)
    assert jnp.allclose(out3, ref2, atol=1e-5, rtol=1e-5), "mismatch vs JAX reference (partial tile)"

    # 4) Layout-plumbing-free path: feature-major in, lane-dense slab out.
    out4 = jax.block_until_ready(
        fcnet_forward(x2.T, w1, b1, w2, b2, feature_major_in=True, feature_major_out=True))
    assert out4.shape == (NUM_CLASS, batch2)
    assert jnp.allclose(out4.T, ref2, atol=1e-5, rtol=1e-5), "mismatch vs JAX reference (feature-major)"

    print("KERNEL_OK")
</pallas_src>

<mosaic_0001>
module attributes {stable_mosaic.version = 11 : i64} {
  func.func @fcnet_kernel(%arg0: i32, %arg1: memref<10x128xf32, #tpu.memory_space<vmem>>, %arg2: memref<16x10xf32, #tpu.memory_space<vmem>>, %arg3: memref<16x1xf32, #tpu.memory_space<vmem>>, %arg4: memref<4x16xf32, #tpu.memory_space<vmem>>, %arg5: memref<4x1xf32, #tpu.memory_space<vmem>>, %arg6: memref<4x128xf32, #tpu.memory_space<vmem>>) attributes {dimension_semantics = [#tpu.dimension_semantics<parallel>], iteration_bounds = array<i64: 1>, scalar_prefetch = 0 : i64, scratch_operands = 0 : i64, tpu.core_type = #tpu.core_type<tc>, window_params = [{transform_indices = @transform_0, window_bounds = array<i64: 10, 128>}, {pipeline_mode = #tpu.pipeline_mode<synchronous>, transform_indices = @transform_1, window_bounds = array<i64: 16, 10>}, {pipeline_mode = #tpu.pipeline_mode<synchronous>, transform_indices = @transform_2, window_bounds = array<i64: 16, 1>}, {pipeline_mode = #tpu.pipeline_mode<synchronous>, transform_indices = @transform_3, window_bounds = array<i64: 4, 16>}, {pipeline_mode = #tpu.pipeline_mode<synchronous>, transform_indices = @transform_4, window_bounds = array<i64: 4, 1>}, {transform_indices = @transform_5, window_bounds = array<i64: 4, 128>}]} {
    %c0 = arith.constant 0 : index
    %c0_0 = arith.constant 0 : index
    %0 = vector.load %arg1[%c0, %c0_0] : memref<10x128xf32, #tpu.memory_space<vmem>>, vector<10x128xf32>
    %c0_1 = arith.constant 0 : index
    %c0_2 = arith.constant 0 : index
    %1 = vector.load %arg2[%c0_1, %c0_2] : memref<16x10xf32, #tpu.memory_space<vmem>>, vector<16x10xf32>
    %cst = arith.constant dense<0.000000e+00> : vector<16x128xf32>
    %2 = tpu.matmul %1, %0, %cst {dimension_numbers = #tpu.dot_dimension_numbers<[1], [0], [0], [1], [0, 0, 1, 1], [], []>} : vector<16x10xf32>, vector<10x128xf32>, vector<16x128xf32> -> vector<16x128xf32>
    %c0_3 = arith.constant 0 : index
    %c0_4 = arith.constant 0 : index
    %3 = vector.load %arg3[%c0_3, %c0_4] : memref<16x1xf32, #tpu.memory_space<vmem>>, vector<16x1xf32>
    %4 = vector.broadcast %3 : vector<16x1xf32> to vector<16x128xf32>
    %5 = arith.addf %2, %4 : vector<16x128xf32>
    %cst_5 = arith.constant 0.00999999977 : f32
    %6 = vector.broadcast %cst_5 : f32 to vector<16x128xf32>
    %7 = arith.mulf %6, %5 : vector<16x128xf32>
    %8 = arith.maximumf %5, %7 : vector<16x128xf32>
    %c0_6 = arith.constant 0 : index
    %c0_7 = arith.constant 0 : index
    %9 = vector.load %arg4[%c0_6, %c0_7] : memref<4x16xf32, #tpu.memory_space<vmem>>, vector<4x16xf32>
    %cst_8 = arith.constant dense<0.000000e+00> : vector<4x128xf32>
    %10 = tpu.matmul %9, %8, %cst_8 {dimension_numbers = #tpu.dot_dimension_numbers<[1], [0], [0], [1], [0, 0, 1, 1], [], []>} : vector<4x16xf32>, vector<16x128xf32>, vector<4x128xf32> -> vector<4x128xf32>
    %c0_9 = arith.constant 0 : index
    %c0_10 = arith.constant 0 : index
    %11 = vector.load %arg5[%c0_9, %c0_10] : memref<4x1xf32, #tpu.memory_space<vmem>>, vector<4x1xf32>
    %12 = vector.broadcast %11 : vector<4x1xf32> to vector<4x128xf32>
    %13 = arith.addf %10, %12 : vector<4x128xf32>
    %c0_11 = arith.constant 0 : index
    %c0_12 = arith.constant 0 : index
    %14 = vector.load %arg6[%c0_11, %c0_12] : memref<4x128xf32, #tpu.memory_space<vmem>>, vector<4x128xf32>
    tpu.vector_store %arg6[%c0_11, %c0_12], %13 {strides = array<i32>} : memref<4x128xf32, #tpu.memory_space<vmem>>, vector<4x128xf32>,
    return
  }
  func.func @transform_0(%arg0: i32) -> (i32, i32) {
    %c0_i32 = arith.constant 0 : i32
    %c0_i32_0 = arith.constant 0 : i32
    return %c0_i32, %arg0 : i32, i32
  }
  func.func @transform_1(%arg0: i32) -> (i32, i32) {
    %c0_i32 = arith.constant 0 : i32
    %c0_i32_0 = arith.constant 0 : i32
    %c0_i32_1 = arith.constant 0 : i32
    return %c0_i32, %c0_i32_0 : i32, i32
  }
  func.func @transform_2(%arg0: i32) -> (i32, i32) {
    %c0_i32 = arith.constant 0 : i32
    %c0_i32_0 = arith.constant 0 : i32
    %c0_i32_1 = arith.constant 0 : i32
    return %c0_i32, %c0_i32_0 : i32, i32
  }
  func.func @transform_3(%arg0: i32) -> (i32, i32) {
    %c0_i32 = arith.constant 0 : i32
    %c0_i32_0 = arith.constant 0 : i32
    %c0_i32_1 = arith.constant 0 : i32
    return %c0_i32, %c0_i32_0 : i32, i32
  }
  func.func @transform_4(%arg0: i32) -> (i32, i32) {
    %c0_i32 = arith.constant 0 : i32
    %c0_i32_0 = arith.constant 0 : i32
    %c0_i32_1 = arith.constant 0 : i32
    return %c0_i32, %c0_i32_0 : i32, i32
  }
  func.func @transform_5(%arg0: i32) -> (i32, i32) {
    %c0_i32 = arith.constant 0 : i32
    %c0_i32_0 = arith.constant 0 : i32
    return %c0_i32, %arg0 : i32, i32
  }
}

</mosaic_0001>

<bundles_post_ra>
// kernel: tpu_custom_call.1
= control target key start
LH: loop header
LB: loop body
LE: loop exit
PB: predicated region body
PF: predicated region fallthrough
CT: control target
= control target key end

     0   :  { %10 = vsyncpa [#allocation3], 0  ;;  %s377_s0 = inlined_call_operand.vmem [shape: f32[10,128], index: 0, kind: input, shape index: {}]   ;;  %s378_s1 = inlined_call_operand.hbm [shape: f32[16,10], index: 1, kind: input, shape index: {}]   ;;  %s379_s2 = inlined_call_operand.vmem [shape: f32[16,1], index: 2, kind: input, shape index: {}]   ;;  %s380_s3 = inlined_call_operand.vmem [shape: f32[4,16], index: 3, kind: input, shape index: {}]   ;;  %s381_s4 = inlined_call_operand.vmem [shape: f32[4,1], index: 4, kind: input, shape index: {}]   ;;  %s382_s5 = inlined_call_operand.hbm [shape: f32[4,128], index: 5, kind: output, shape index: {}]  }
   0x1   :  { %11 = vsyncpa [#allocation4], 0  ;;  %s316_s18 = smov [#allocation2]  }
   0x2   :  { %s19_s19 = sshll.u32 %s316_s18, 4  ;;  %s20_s19 = int_to_ptr.vmem [resolvable:$true] %s19_s19 }
   0x3   :  { %s280_s20 = scalar_lea.vmem %s20_s19, 256  ;;  %p285_p1 = scmp.lt.s32.totalorder %s20_s19, %s20_s19 }
   0x4   :  { %p281_p0 = scmp.ne.s32.totalorder %s20_s19, %s280_s20  ;;  %p286_p2 = scmp.lt.s32.totalorder %s280_s20, %s280_s20 }
   0x6   :  { %p287_p3 = por %p286_p2, %p285_p1 }
   0x8   :  { %p288_p4 = pnand %p287_p3, %p281_p0 }
   0xa   :  { %291 = shalt.err (!%p288_p4)
}
   0xb   :  { %s317_s21 = smov 128   ;;  %s318_s22 = smov 8  }
   0xc   :  { %25 = dma.hbm_to_vmem [thread:$0]  %s378_s1, 256, %s20_s19, [#allocation3], %s317_s21, %s317_s21, %s318_s22  }
   0xd   :  { %312 = dma.done.wait [#allocation3], 256  }
   0xe   :  { %313 = vsyncadd [#allocation3], 4294967040  ;;  %v319_v0 = vmov 0   ;;  %vm58_vm0 = vcmask 1041408   ;;  %vm51_vm1 = vcmask 80896   ;;  %v35_v2 = vld [vmem:[%s377_s0] sm:$0xff] }
   0xf   :  { %270 = vset.pattern.permute.xlu0 %v319_v0  ;;  %271 = vset.pattern.permute.xlu1 %v319_v0  ;;  %v36_v1 = vld [vmem:[%s377_s0 + $0x8] sm:$0x3]  ;;  %v37_v3 = vld [vmem:[#allocation2] sm:$0xff]  ;;  %v320_v7 = vmov 0.0   ;;  %vm321_vm2 = vmmov 0   ;;  %vm148_vm3 = vcmask 130048  }
  0x10   :  { %249 = vmatprep.subr.msk.mxu0 %vm58_vm0, %v36_v1  ;;  %253 = vmatprep.mubr.msk.f32.mxu0 %vm51_vm1, %v37_v3  ;;  %v40_v4 = vld [vmem:[%s379_s2 + $0x8] sm:$0xff]  ;;  %v39_v6 = vld [vmem:[%s379_s2] sm:$0xff] }
  0x11   :  { %250 = vmatpush3.msk.msra.mxu0 %vm58_vm0, %v36_v1  ;;  %v38_v5 = vld [vmem:[#allocation2 + $0x8] sm:$0xff]  ;;  %48 = vperm.xlu0 %270, %v40_v4   ;;  %v142_v8 = vld [vmem:[%s381_s4] sm:$0xf]  ;;  %s322_s4 = smov [#allocation5]  }
  0x12   :  { %251 = vmatprep.subr.mxu0 %v35_v2  ;;  %256 = vmatprep.subr.mxu1 %v320_v7  ;;  %v141_v19 = vld [vmem:[%s380_s3] sm:$0xf]  ;;  %s229_s9 = sshll.u32 %s322_s4, 4  ;;  %s230_s9 = int_to_ptr.vmem [resolvable:$true] %s229_s9 }
  0x13   :  { %252 = vmatpush3.msra.mxu0 %v35_v2  ;;  %260 = vmatprep.mubr.msk.f32.mxu1 %vm321_vm2, %v320_v7  ;;  %s292_s10 = scalar_lea.vmem %s230_s9, 64  ;;  %p297_p6 = scmp.lt.s32.totalorder %s230_s9, %s230_s9 }
  0x14   :  { %254 = vmatmul.mubr.msk.f32.vlgmr.msra.gmra.mxu0 %vm51_vm1, %v38_v5  ;;  %145 = vperm.xlu1 %271, %v142_v8   ;;  %p293_p5 = scmp.ne.s32.totalorder %s230_s9, %s292_s10  ;;  %p298_p7 = scmp.lt.s32.totalorder %s292_s10, %s292_s10 }
  0x15   :  { %43 = vperm.xlu0 %270, %v39_v6  }
  0x16   :  { %p299_p8 = por %p298_p7, %p297_p6 }
  0x18   :  { %p300_p9 = pnand %p299_p8, %p293_p5 }
  0x8c   :  { %v49_v9 = vpop.permute.xlu0 %48 }
  0x8f   :  { %v146_v20 = vpop.permute.xlu1 %145 }
  0x90   :  { %v44_v12 = vpop.permute.xlu0 %43 }
  0xd4   :  { %v255_v10 = vpop.f32.mrf.mxu0 }
  0xd5   :  { %v134_v11 = vadd.f32 %v255_v10, %v49_v9 }
  0xd6   :  { %v128_v13 = vpop.f32.mrf.mxu0 }
  0xd7   :  { %v138_v14 = vmul.f32 0.01, %v134_v11  ;;  %v129_v15 = vadd.f32 %v128_v13, %v44_v12 }
  0xd9   :  { %v137_v16 = vmul.f32 0.01, %v129_v15  ;;  %v140_v17 = vmax.f32 %v134_v11, %v138_v14 }
  0xdb   :  { %v139_v18 = vmax.f32 %v129_v15, %v137_v16  ;;  %257 = vmatpush3.msra.mxu1 %v140_v17 }
  0xdc   :  { %258 = vmatprep.subr.mxu1 %v320_v7 }
  0xdd   :  { %259 = vmatpush3.msra.mxu1 %v139_v18 }
  0xde   :  { %261 = vmatmul.mubr.msk.f32.vlgmr.msra.gmra.mxu1 %vm148_vm3, %v141_v19 }
 0x19e   :  { %v218_v21 = vpop.f32.mrf.mxu1 }
 0x19f   :  { %v219_v22 = vadd.f32 %v218_v21, %v146_v20 }
 0x1a0   :  { %v262_v23 = vpop.f32.mrf.mxu1 }
 0x1a1   :  { %222 = vst [vmem:[#allocation5] sm:$0xf] %v219_v22 }
 0x1a2   :  { %303 = shalt.err (!%p300_p9)
}
 0x1a3   :  { %232 = dma.vmem_to_hbm [thread:$0]  %s230_s9, 64, %s382_s5, [#allocation4]  }
 0x1a4   :  { %314 = dma.done.wait [#allocation4], 64  }
 0x1a5   :  { %315 = vsyncadd [#allocation4], 4294967232 }
 0x1a6   :  { %236 = vsyncpa [#allocation3], 1 }
 0x1a7   :  { %237 = vsyncpa [#allocation4], 1 }

</bundles_post_ra>
